<compile_context>
chip_gen: v6e
topology: v6e:2x2x1
jax: 0.10.0
libtpu: 0.0.40
codegen_flags: <defaults>
</compile_context>

<pallas_src>
import functools

import jax
import jax.numpy as jnp
from jax.experimental import pallas as pl
from jax.experimental.pallas import tpu as pltpu

_LANE = 128
_GENERIC_BLOCK_BUDGET = 4 * 1024 * 1024    # padded bytes per in/out block (generic path)
_SMALLC_BLOCK_BUDGET = 2 * 1024 * 1024     # padded bytes per in/out block (small-C path)
_SELECT_MATRIX_BUDGET = 4 * 1024 * 1024    # one-hot interleave matrix resident in VMEM
_MAX_INTERLEAVE_CHANNELS = 32              # small-C MXU path used for 2 <= C <= 32
_VMEM_LIMIT_BYTES = 32 * 1024 * 1024       # 2x double-buffered (in+out) + scratch head-room


# --------------------------------------------------------------------------- #
# Layout / footprint helpers
# --------------------------------------------------------------------------- #
def _sublane(dtype) -> int:
    """Native sublane packing: f32 -> 8, bf16 -> 16, int8/fp8 -> 32."""
    return max(8, 32 // jnp.dtype(dtype).itemsize)


def _rup(x: int, m: int) -> int:
    return -(-x // m) * m


def _padded_block_bytes(shape, dtype) -> int:
    """VMEM footprint of a block after (sublane, lane) padding of the last 2 dims."""
    shape = tuple(shape)
    if len(shape) == 1:
        shape = (1,) + shape
    lead = 1
    for d in shape[:-2]:
        lead *= d
    rows, cols = shape[-2], shape[-1]
    return lead * _rup(rows, _sublane(dtype)) * _rup(cols, _LANE) * jnp.dtype(dtype).itemsize


# --------------------------------------------------------------------------- #
# Generic path: per-image 2-D transpose (C, H*W) -> (H*W, C), tiled.
# Used for C >= 128-ish (lane-dense or nearly lane-dense output tiles).
# --------------------------------------------------------------------------- #
def _generic_fits(t_c: int, t_hw: int, dtype) -> bool:
    return (_padded_block_bytes((t_c, t_hw), dtype) <= _GENERIC_BLOCK_BUDGET
            and _padded_block_bytes((t_hw, t_c), dtype) <= _GENERIC_BLOCK_BUDGET)


def _pick_generic_tiles(C: int, HW: int, dtype):
    # Channel tile: prefer the full C (one contiguous HBM writeback region per
    # output row, widest unmasked stores); otherwise the largest multiple of
    # 128 that still leaves room for a >=256-wide spatial tile.
    if C <= _LANE or _generic_fits(C, 2 * _LANE, dtype):
        t_c = C
    else:
        t_c = (C // _LANE) * _LANE
        while t_c > _LANE and not _generic_fits(t_c, 2 * _LANE, dtype):
            t_c -= _LANE
    # Spatial tile: full extent if it fits, else the largest multiple of 128
    # inside the budget.  Edge blocks are handled by the cdiv grid (no
    # "divides the extent" requirement, no full-extent-over-budget fallback).
    if _generic_fits(t_c, HW, dtype):
        t_hw = HW
    else:
        t_hw = _LANE
        cand = 2 * _LANE
        while cand < HW and _generic_fits(t_c, cand, dtype):
            t_hw = cand
            cand += _LANE
    return t_c, t_hw


def _transpose_tile_kernel(x_ref, o_ref):
    # x_ref: (t_c, t_hw) tile of one image's (C, H*W) slab.
    # o_ref: (t_hw, t_c) tile of that image's (H*W, C) slab.
    o_ref[...] = jnp.transpose(x_ref[...], (1, 0))


def _nchw_to_nhwc_generic(x: jax.Array) -> jax.Array:
    N, C, H, W = x.shape
    HW = H * W
    itemsize = jnp.dtype(x.dtype).itemsize
    t_c, t_hw = _pick_generic_tiles(C, HW, x.dtype)

    x2 = x.reshape(N, C, HW)  # contiguous (free) view

    y2 = pl.pallas_call(
        _transpose_tile_kernel,
        out_shape=jax.ShapeDtypeStruct((N, HW, C), x.dtype),
        grid_spec=pltpu.PrefetchScalarGridSpec(
            num_scalar_prefetch=0,
            grid=(N, pl.cdiv(C, t_c), pl.cdiv(HW, t_hw)),
            in_specs=[
                pl.BlockSpec((None, t_c, t_hw), lambda n, c, s: (n, c, s)),
            ],
            out_specs=pl.BlockSpec((None, t_hw, t_c), lambda n, c, s: (n, s, c)),
        ),
        compiler_params=pltpu.CompilerParams(
            dimension_semantics=("parallel", "parallel", "parallel"),
            vmem_limit_bytes=_VMEM_LIMIT_BYTES,
        ),
        cost_estimate=pl.CostEstimate(
            flops=0,
            transcendentals=0,
            bytes_accessed=2 * N * C * HW * itemsize,
        ),
    )(x2)

    return y2.reshape(N, H, W, C)  # contiguous (free) view


# --------------------------------------------------------------------------- #
# Small-C path: lane-dense output (N, H, W*C) via exact one-hot MXU matmuls.
# out[h, w*C + c] = x[c, h, w]  <=>  out_row = sum_c x[c] @ E_c,
# where E_c[w, j] = 1 iff j == w*C + c (each output element gets exactly one
# input element times 1.0 plus exact zeros -> pure data movement).
# --------------------------------------------------------------------------- #
def _interleave_matrix(C: int, W: int, dtype):
    j = jnp.arange(W * C, dtype=jnp.int32)[None, None, :]
    w = jnp.arange(W, dtype=jnp.int32)[None, :, None]
    c = jnp.arange(C, dtype=jnp.int32)[:, None, None]
    return (j == w * C + c).astype(dtype)   # (C, W, W*C), exact 0/1 values


def _interleave_kernel(x_ref, e_ref, o_ref, *, split_f32: bool):
    # x_ref: (C, t_h, W) NCHW tile, e_ref: (C, W, W*C) one-hot, o_ref: (t_h, W*C).
    C = x_ref.shape[0]
    acc = jnp.zeros(o_ref.shape, jnp.float32)
    for c in range(C):                       # C is small & static -> unrolled
        xc = x_ref[c]
        ec = e_ref[c]
        if split_f32:
            # Exact f32 relayout: x == hi + mid + lo, every part bf16-exact,
            # so each one-hot matmul moves the bits unchanged (normal floats).
            hi = xc.astype(jnp.bfloat16)
            r1 = xc - hi.astype(jnp.float32)
            mid = r1.astype(jnp.bfloat16)
            lo = (r1 - mid.astype(jnp.float32)).astype(jnp.bfloat16)
            for part in (hi, mid, lo):
                acc = acc + jnp.dot(part, ec, preferred_element_type=jnp.float32)
        else:
            acc = acc + jnp.dot(xc, ec, preferred_element_type=jnp.float32)
    o_ref[...] = acc.astype(o_ref.dtype)


def _pick_row_tile(C: int, H: int, W: int, dtype) -> int:
    sub = _sublane(dtype)

    def fits(t_h):
        return (_padded_block_bytes((C, t_h, W), dtype) <= _SMALLC_BLOCK_BUDGET
                and _padded_block_bytes((t_h, W * C), dtype) <= _SMALLC_BLOCK_BUDGET)

    if fits(H):
        return H                             # full extent (always legal)
    t_h = sub
    cand = 2 * sub
    while cand < H and fits(cand):
        t_h = cand
        cand += sub
    return t_h                               # multiple of the sublane count


def _use_interleave_path(C: int, W: int, dtype) -> bool:
    name = jnp.dtype(dtype).name
    if name not in ("float32", "bfloat16"):
        return False
    if C < 2 or C > _MAX_INTERLEAVE_CHANNELS:
        return False
    e_bytes = (W * C) * (W * C) * 2          # bf16 one-hot matrix footprint
    return e_bytes <= _SELECT_MATRIX_BUDGET


def _nchw_to_nhwc_small_c(x: jax.Array) -> jax.Array:
    N, C, H, W = x.shape
    dt = jnp.dtype(x.dtype)
    split_f32 = dt.name == "float32"
    e = _interleave_matrix(C, W, jnp.bfloat16)     # MXU operands are bf16 in both modes
    t_h = _pick_row_tile(C, H, W, x.dtype)
    kernel = functools.partial(_interleave_kernel, split_f32=split_f32)

    y2 = pl.pallas_call(
        kernel,
        out_shape=jax.ShapeDtypeStruct((N, H, W * C), x.dtype),
        grid_spec=pltpu.PrefetchScalarGridSpec(
            num_scalar_prefetch=0,
            grid=(N, pl.cdiv(H, t_h)),
            in_specs=[
                pl.BlockSpec((None, C, t_h, W), lambda n, h: (n, 0, h, 0)),
                # Constant block index -> fetched once, stays resident in VMEM.
                pl.BlockSpec((C, W, W * C), lambda n, h: (0, 0, 0)),
            ],
            out_specs=pl.BlockSpec((None, t_h, W * C), lambda n, h: (n, h, 0)),
        ),
        compiler_params=pltpu.CompilerParams(
            dimension_semantics=("parallel", "parallel"),
            vmem_limit_bytes=_VMEM_LIMIT_BYTES,
        ),
        cost_estimate=pl.CostEstimate(
            flops=2 * N * H * W * C * (W * C) * (3 if split_f32 else 1),
            transcendentals=0,
            bytes_accessed=2 * N * C * H * W * dt.itemsize + e.size * 2,
        ),
    )(x, e)

    return y2.reshape(N, H, W, C)            # contiguous (free) view


# --------------------------------------------------------------------------- #
# Public entry point
# --------------------------------------------------------------------------- #
def nchw_to_nhwc(x: jax.Array) -> jax.Array:
    """Pallas TPU implementation of cudnnNchwToNhwc: y[n,h,w,c] = x[n,c,h,w]."""
    N, C, H, W = x.shape
    if C == 1:
        # Degenerate case: NCHW and NHWC share the same memory order.
        return x.reshape(N, H, W, C)
    if _use_interleave_path(C, W, x.dtype):
        return _nchw_to_nhwc_small_c(x)
    return _nchw_to_nhwc_generic(x)


if __name__ == "__main__":
    key0, key1 = jax.random.split(jax.random.PRNGKey(0))

    # Primary check: canonical small-C conv-input case (lane-dense MXU path).
    x = jax.random.normal(key0, (2, 4, 16, 16), dtype=jnp.float32)
    y = jax.block_until_ready(nchw_to_nhwc(x))
    y_ref = jnp.transpose(x, (0, 2, 3, 1))
    assert y.shape == (2, 16, 16, 4), y.shape
    assert y.dtype == x.dtype
    assert bool(jnp.array_equal(y, y_ref)), "small-C path mismatch vs. reference"

    # Secondary check: generic tiled 2-D transpose path (C >= 128).
    x2 = jax.random.normal(key1, (1, 128, 8, 8), dtype=jnp.float32)
    y2 = jax.block_until_ready(nchw_to_nhwc(x2))
    y2_ref = jnp.transpose(x2, (0, 2, 3, 1))
    assert bool(jnp.array_equal(y2, y2_ref)), "generic path mismatch vs. reference"

    print("KERNEL_OK")
</pallas_src>

<mosaic_0001>
module attributes {stable_mosaic.version = 11 : i64} {
  func.func @_interleave_kernel(%arg0: i32, %arg1: i32, %arg2: memref<1x4x16x16xf32, #tpu.memory_space<vmem>>, %arg3: memref<4x16x64xbf16, #tpu.memory_space<vmem>>, %arg4: memref<1x16x64xf32, #tpu.memory_space<vmem>>) attributes {dimension_semantics = [#tpu.dimension_semantics<parallel>, #tpu.dimension_semantics<parallel>], iteration_bounds = array<i64: 2, 1>, scalar_prefetch = 0 : i64, scratch_operands = 0 : i64, tpu.core_type = #tpu.core_type<tc>, window_params = [{transform_indices = @transform_0, window_bounds = array<i64: 1, 4, 16, 16>}, {pipeline_mode = #tpu.pipeline_mode<synchronous>, transform_indices = @transform_1, window_bounds = array<i64: 4, 16, 64>}, {transform_indices = @transform_2, window_bounds = array<i64: 1, 16, 64>}]} {
    %cst = arith.constant 0.000000e+00 : f32
    %0 = vector.broadcast %cst : f32 to vector<16x64xf32>
    %c0 = arith.constant 0 : index
    %c0_0 = arith.constant 0 : index
    %c0_1 = arith.constant 0 : index
    %c0_2 = arith.constant 0 : index
    %1 = vector.load %arg2[%c0, %c0_0, %c0_1, %c0_2] : memref<1x4x16x16xf32, #tpu.memory_space<vmem>>, vector<1x1x16x16xf32>
    %2 = vector.shape_cast %1 : vector<1x1x16x16xf32> to vector<16x16xf32>
    %c0_3 = arith.constant 0 : index
    %c0_4 = arith.constant 0 : index
    %c0_5 = arith.constant 0 : index
    %3 = vector.load %arg3[%c0_3, %c0_4, %c0_5] : memref<4x16x64xbf16, #tpu.memory_space<vmem>>, vector<1x16x64xbf16>
    %4 = vector.shape_cast %3 : vector<1x16x64xbf16> to vector<16x64xbf16>
    %5 = arith.truncf %2 : vector<16x16xf32> to vector<16x16xbf16>
    %6 = arith.extf %5 : vector<16x16xbf16> to vector<16x16xf32>
    %7 = arith.subf %2, %6 : vector<16x16xf32>
    %8 = arith.truncf %7 : vector<16x16xf32> to vector<16x16xbf16>
    %9 = arith.extf %8 : vector<16x16xbf16> to vector<16x16xf32>
    %10 = arith.subf %7, %9 : vector<16x16xf32>
    %11 = arith.truncf %10 : vector<16x16xf32> to vector<16x16xbf16>
    %cst_6 = arith.constant dense<0.000000e+00> : vector<16x64xf32>
    %12 = tpu.matmul %5, %4, %cst_6 {dimension_numbers = #tpu.dot_dimension_numbers<[1], [0], [0], [1], [0, 0, 1, 1], [], []>} : vector<16x16xbf16>, vector<16x64xbf16>, vector<16x64xf32> -> vector<16x64xf32>
    %13 = arith.addf %0, %12 : vector<16x64xf32>
    %cst_7 = arith.constant dense<0.000000e+00> : vector<16x64xf32>
    %14 = tpu.matmul %8, %4, %cst_7 {dimension_numbers = #tpu.dot_dimension_numbers<[1], [0], [0], [1], [0, 0, 1, 1], [], []>} : vector<16x16xbf16>, vector<16x64xbf16>, vector<16x64xf32> -> vector<16x64xf32>
    %15 = arith.addf %13, %14 : vector<16x64xf32>
    %cst_8 = arith.constant dense<0.000000e+00> : vector<16x64xf32>
    %16 = tpu.matmul %11, %4, %cst_8 {dimension_numbers = #tpu.dot_dimension_numbers<[1], [0], [0], [1], [0, 0, 1, 1], [], []>} : vector<16x16xbf16>, vector<16x64xbf16>, vector<16x64xf32> -> vector<16x64xf32>
    %17 = arith.addf %15, %16 : vector<16x64xf32>
    %c0_9 = arith.constant 0 : index
    %c1 = arith.constant 1 : index
    %c0_10 = arith.constant 0 : index
    %c0_11 = arith.constant 0 : index
    %18 = vector.load %arg2[%c0_9, %c1, %c0_10, %c0_11] : memref<1x4x16x16xf32, #tpu.memory_space<vmem>>, vector<1x1x16x16xf32>
    %19 = vector.shape_cast %18 : vector<1x1x16x16xf32> to vector<16x16xf32>
    %c1_12 = arith.constant 1 : index
    %c0_13 = arith.constant 0 : index
    %c0_14 = arith.constant 0 : index
    %20 = vector.load %arg3[%c1_12, %c0_13, %c0_14] : memref<4x16x64xbf16, #tpu.memory_space<vmem>>, vector<1x16x64xbf16>
    %21 = vector.shape_cast %20 : vector<1x16x64xbf16> to vector<16x64xbf16>
    %22 = arith.truncf %19 : vector<16x16xf32> to vector<16x16xbf16>
    %23 = arith.extf %22 : vector<16x16xbf16> to vector<16x16xf32>
    %24 = arith.subf %19, %23 : vector<16x16xf32>
    %25 = arith.truncf %24 : vector<16x16xf32> to vector<16x16xbf16>
    %26 = arith.extf %25 : vector<16x16xbf16> to vector<16x16xf32>
    %27 = arith.subf %24, %26 : vector<16x16xf32>
    %28 = arith.truncf %27 : vector<16x16xf32> to vector<16x16xbf16>
    %cst_15 = arith.constant dense<0.000000e+00> : vector<16x64xf32>
    %29 = tpu.matmul %22, %21, %cst_15 {dimension_numbers = #tpu.dot_dimension_numbers<[1], [0], [0], [1], [0, 0, 1, 1], [], []>} : vector<16x16xbf16>, vector<16x64xbf16>, vector<16x64xf32> -> vector<16x64xf32>
    %30 = arith.addf %17, %29 : vector<16x64xf32>
    %cst_16 = arith.constant dense<0.000000e+00> : vector<16x64xf32>
    %31 = tpu.matmul %25, %21, %cst_16 {dimension_numbers = #tpu.dot_dimension_numbers<[1], [0], [0], [1], [0, 0, 1, 1], [], []>} : vector<16x16xbf16>, vector<16x64xbf16>, vector<16x64xf32> -> vector<16x64xf32>
    %32 = arith.addf %30, %31 : vector<16x64xf32>
    %cst_17 = arith.constant dense<0.000000e+00> : vector<16x64xf32>
    %33 = tpu.matmul %28, %21, %cst_17 {dimension_numbers = #tpu.dot_dimension_numbers<[1], [0], [0], [1], [0, 0, 1, 1], [], []>} : vector<16x16xbf16>, vector<16x64xbf16>, vector<16x64xf32> -> vector<16x64xf32>
    %34 = arith.addf %32, %33 : vector<16x64xf32>
    %c0_18 = arith.constant 0 : index
    %c2 = arith.constant 2 : index
    %c0_19 = arith.constant 0 : index
    %c0_20 = arith.constant 0 : index
    %35 = vector.load %arg2[%c0_18, %c2, %c0_19, %c0_20] : memref<1x4x16x16xf32, #tpu.memory_space<vmem>>, vector<1x1x16x16xf32>
    %36 = vector.shape_cast %35 : vector<1x1x16x16xf32> to vector<16x16xf32>
    %c2_21 = arith.constant 2 : index
    %c0_22 = arith.constant 0 : index
    %c0_23 = arith.constant 0 : index
    %37 = vector.load %arg3[%c2_21, %c0_22, %c0_23] : memref<4x16x64xbf16, #tpu.memory_space<vmem>>, vector<1x16x64xbf16>
    %38 = vector.shape_cast %37 : vector<1x16x64xbf16> to vector<16x64xbf16>
    %39 = arith.truncf %36 : vector<16x16xf32> to vector<16x16xbf16>
    %40 = arith.extf %39 : vector<16x16xbf16> to vector<16x16xf32>
    %41 = arith.subf %36, %40 : vector<16x16xf32>
    %42 = arith.truncf %41 : vector<16x16xf32> to vector<16x16xbf16>
    %43 = arith.extf %42 : vector<16x16xbf16> to vector<16x16xf32>
    %44 = arith.subf %41, %43 : vector<16x16xf32>
    %45 = arith.truncf %44 : vector<16x16xf32> to vector<16x16xbf16>
    %cst_24 = arith.constant dense<0.000000e+00> : vector<16x64xf32>
    %46 = tpu.matmul %39, %38, %cst_24 {dimension_numbers = #tpu.dot_dimension_numbers<[1], [0], [0], [1], [0, 0, 1, 1], [], []>} : vector<16x16xbf16>, vector<16x64xbf16>, vector<16x64xf32> -> vector<16x64xf32>
    %47 = arith.addf %34, %46 : vector<16x64xf32>
    %cst_25 = arith.constant dense<0.000000e+00> : vector<16x64xf32>
    %48 = tpu.matmul %42, %38, %cst_25 {dimension_numbers = #tpu.dot_dimension_numbers<[1], [0], [0], [1], [0, 0, 1, 1], [], []>} : vector<16x16xbf16>, vector<16x64xbf16>, vector<16x64xf32> -> vector<16x64xf32>
    %49 = arith.addf %47, %48 : vector<16x64xf32>
    %cst_26 = arith.constant dense<0.000000e+00> : vector<16x64xf32>
    %50 = tpu.matmul %45, %38, %cst_26 {dimension_numbers = #tpu.dot_dimension_numbers<[1], [0], [0], [1], [0, 0, 1, 1], [], []>} : vector<16x16xbf16>, vector<16x64xbf16>, vector<16x64xf32> -> vector<16x64xf32>
    %51 = arith.addf %49, %50 : vector<16x64xf32>
    %c0_27 = arith.constant 0 : index
    %c3 = arith.constant 3 : index
    %c0_28 = arith.constant 0 : index
    %c0_29 = arith.constant 0 : index
    %52 = vector.load %arg2[%c0_27, %c3, %c0_28, %c0_29] : memref<1x4x16x16xf32, #tpu.memory_space<vmem>>, vector<1x1x16x16xf32>
    %53 = vector.shape_cast %52 : vector<1x1x16x16xf32> to vector<16x16xf32>
    %c3_30 = arith.constant 3 : index
    %c0_31 = arith.constant 0 : index
    %c0_32 = arith.constant 0 : index
    %54 = vector.load %arg3[%c3_30, %c0_31, %c0_32] : memref<4x16x64xbf16, #tpu.memory_space<vmem>>, vector<1x16x64xbf16>
    %55 = vector.shape_cast %54 : vector<1x16x64xbf16> to vector<16x64xbf16>
    %56 = arith.truncf %53 : vector<16x16xf32> to vector<16x16xbf16>
    %57 = arith.extf %56 : vector<16x16xbf16> to vector<16x16xf32>
    %58 = arith.subf %53, %57 : vector<16x16xf32>
    %59 = arith.truncf %58 : vector<16x16xf32> to vector<16x16xbf16>
    %60 = arith.extf %59 : vector<16x16xbf16> to vector<16x16xf32>
    %61 = arith.subf %58, %60 : vector<16x16xf32>
    %62 = arith.truncf %61 : vector<16x16xf32> to vector<16x16xbf16>
    %cst_33 = arith.constant dense<0.000000e+00> : vector<16x64xf32>
    %63 = tpu.matmul %56, %55, %cst_33 {dimension_numbers = #tpu.dot_dimension_numbers<[1], [0], [0], [1], [0, 0, 1, 1], [], []>} : vector<16x16xbf16>, vector<16x64xbf16>, vector<16x64xf32> -> vector<16x64xf32>
    %64 = arith.addf %51, %63 : vector<16x64xf32>
    %cst_34 = arith.constant dense<0.000000e+00> : vector<16x64xf32>
    %65 = tpu.matmul %59, %55, %cst_34 {dimension_numbers = #tpu.dot_dimension_numbers<[1], [0], [0], [1], [0, 0, 1, 1], [], []>} : vector<16x16xbf16>, vector<16x64xbf16>, vector<16x64xf32> -> vector<16x64xf32>
    %66 = arith.addf %64, %65 : vector<16x64xf32>
    %cst_35 = arith.constant dense<0.000000e+00> : vector<16x64xf32>
    %67 = tpu.matmul %62, %55, %cst_35 {dimension_numbers = #tpu.dot_dimension_numbers<[1], [0], [0], [1], [0, 0, 1, 1], [], []>} : vector<16x16xbf16>, vector<16x64xbf16>, vector<16x64xf32> -> vector<16x64xf32>
    %68 = arith.addf %66, %67 : vector<16x64xf32>
    %c0_36 = arith.constant 0 : index
    %c0_37 = arith.constant 0 : index
    %c0_38 = arith.constant 0 : index
    %69 = vector.load %arg4[%c0_36, %c0_37, %c0_38] : memref<1x16x64xf32, #tpu.memory_space<vmem>>, vector<1x16x64xf32>
    %70 = vector.shape_cast %69 : vector<1x16x64xf32> to vector<16x64xf32>
    %71 = vector.shape_cast %68 : vector<16x64xf32> to vector<1x16x64xf32>
    tpu.vector_store %arg4[%c0_36, %c0_37, %c0_38], %71 {strides = array<i32>} : memref<1x16x64xf32, #tpu.memory_space<vmem>>, vector<1x16x64xf32>,
    return
  }
  func.func @transform_0(%arg0: i32, %arg1: i32) -> (i32, i32, i32, i32) {
    %c0_i32 = arith.constant 0 : i32
    %c0_i32_0 = arith.constant 0 : i32
    %c0_i32_1 = arith.constant 0 : i32
    return %arg0, %c0_i32, %arg1, %c0_i32_0 : i32, i32, i32, i32
  }
  func.func @transform_1(%arg0: i32, %arg1: i32) -> (i32, i32, i32) {
    %c0_i32 = arith.constant 0 : i32
    %c0_i32_0 = arith.constant 0 : i32
    %c0_i32_1 = arith.constant 0 : i32
    %c0_i32_2 = arith.constant 0 : i32
    return %c0_i32, %c0_i32_0, %c0_i32_1 : i32, i32, i32
  }
  func.func @transform_2(%arg0: i32, %arg1: i32) -> (i32, i32, i32) {
    %c0_i32 = arith.constant 0 : i32
    %c0_i32_0 = arith.constant 0 : i32
    return %arg0, %arg1, %c0_i32 : i32, i32, i32
  }
}

</mosaic_0001>

<bundles_post_ra>
// kernel: tpu_custom_call.1
= control target key start
LH: loop header
LB: loop body
LE: loop exit
PB: predicated region body
PF: predicated region fallthrough
CT: control target
= control target key end

     0   :  { %7 = vsyncpa [#allocation3], 0  ;;  %s1581_s0 = inlined_call_operand.hbm [shape: f32[2,4,16,16], index: 0, kind: input, shape index: {}]   ;;  %s1582_s1 = inlined_call_operand.hbm [shape: bf16[4,16,64], index: 1, kind: input, shape index: {}]   ;;  %s1583_s2 = inlined_call_operand.hbm [shape: f32[2,16,64], index: 2, kind: output, shape index: {}]  }
   0x1   :  { %9 = vsyncpa [#allocation3 + $0x1], 0 }
   0x2   :  { %10 = vsyncpa [#allocation6], 0 }
   0x3   :  { %11 = vsyncpa [#allocation4], 0 }
   0x4   :  { %13 = vsyncpa [#allocation4 + $0x1], 0  ;;  %s1341_s9 = smov 0   ;;  %s1343_s10 = smov 0  }
   0x5   :  { %s1345_s11 = smov 0   ;;  %s1347_s12 = smov 0  }
   0x6   :  { %s1349_s13 = smov 0   ;;  %s1351_s14 = smov 0  }
   0x7 LB: > { %s953_s15 = sadd.s32 4294967295, %s1313_s14   ;;  %s954_s16 = sadd.s32 4294967294, %s1313_s14   ;;  %s1313_s14 = sphi %s1351_s14, %s19_s14   ;;  %s1309_s13 = sphi %s1349_s13, %s1601_s13   ;;  %s1305_s12 = sphi %s1347_s12, %s1600_s12   ;;  %s1301_s11 = sphi %s1345_s11, %s1599_s11   ;;  %s1297_s10 = sphi %s1343_s10, %s1598_s10   ;;  %s1293_s9 = sphi %s1341_s9, %s1597_s9  }
   0x8   : > { %p53_p0 = scmp.ne.s32.totalorder %s1297_s10, %s1293_s9  ;;  %p1375_p1 = scmp.eq.s32.totalorder %s953_s15, 0 }
   0x9   : > { %p1379_p2 = scmp.eq.s32.totalorder %s953_s15, 1  ;;  %p106_p3 = scmp.eq.s32.totalorder %s954_s16, 1 }
   0xa   : > { %p1385_p4 = por %p1375_p1, %p53_p0  ;;  %p955_p5 = scmp.ge.s32.totalorder %s1313_s14, 1 }
   0xb   : > { %p1390_p6 = por %p106_p3, %p53_p0  ;;  %p113_p7 = scmp.lt.s32.totalorder %s1313_s14, 3 }
   0xc   : > { %s1587_s19 = scalar_select %p1385_p4, 1, 0 }
   0xd   : > { %s1588_s20 = scalar_select %p1390_p6, 1, 0 }
   0xe   : > { %p1395_p8 = pnand %p955_p5, %p113_p7  ;;  %s1315_s22 = smov [#allocation5]  }
   0xf   : > { %s125_s23 = sshll.u32 %s1315_s22, 4  ;;  %s31_s25 = sadd.s32 1, %s1309_s13  ;;  %s126_s23 = int_to_ptr.vmem [resolvable:$true] %s125_s23 }
  0x10   : > { %p1098_p9 = pneg %p1395_p8  ;;  %s1186_s26 = scalar_lea.vmem %s126_s23, 512 }
  0x11   : > { %p1187_p13 = scmp.ne.s32.totalorder %s126_s23, %s1186_s26  ;;  %p1194_p5 = scmp.lt.s32.totalorder %s126_s23, %s126_s23 }
  0x12   : > { %p1404_p11 = pnand %p1098_p9, %p1375_p1  ;;  %p1195_p7 = scmp.lt.s32.totalorder %s1186_s26, %s1186_s26 }
  0x14   : > { %p1177_p12 = pneg %p1404_p11  ;;  %p1196_p6 = por %p1195_p7, %p1194_p5 }
  0x16   : > { %p1189_p0 = pnand %p1187_p13, %p1177_p12 }
  0x18   : > { %p1190_p3 = pneg %p1189_p0 }
  0x1a   : > { %p1197_p4 = pnand %p1196_p6, %p1190_p3 }
  0x1c   : > { %1200 = shalt.err (!%p1197_p4)
}
  0x1d   : > { %s1316_s27 = smov 64   ;;  %s1317_s28 = smov 4  }
  0x1e   : > { %1101 = dma.hbm_to_vmem [thread:$0]  (!%p1404_p11), %s1582_s1, 512, %s126_s23, [#allocation6], %s1316_s27, %s1316_s27, %s1317_s28  }
  0x1f   : > { %p33_p6 = scmp.ge.s32.totalorder %s31_s25, 2  ;;  %s40_s3 = sadd.s32 1, %s1301_s11 }
  0x20   : > { %p47_p4 = scmp.ne.s32.totalorder %s1301_s11, %s1297_s10  ;;  %p48_p9 = scmp.eq.s32.totalorder %s1313_s14, 0 }
  0x21   : > { %s1603_s25 = smov (%p33_p6, %s31_s25), 0  ;;  %p1111_p0 = scmp.lt.s32.totalorder %s1313_s14, 2 }
  0x22   : > { %p1422_p12 = por %p48_p9, %p47_p4  ;;  %p1428_p13 = por %p1379_p2, %p47_p4 }
  0x23   : > { %s35_s6 = ssub.s32 %s1309_s13, %s1603_s25  ;;  %s139_s7 = sand.u32 1, %s1301_s11  }
  0x24   : > { %p38_p11 = scmp.eq.s32.totalorder %s35_s6, 0  ;;  %s958_s8 = sshll.u32 %s139_s7, 6 }
  0x25   : > { %s992_s16 = sshll.u32 %s1309_s13, 10  ;;  %s143_s26 = scalar_lea.vmem [#allocation2], %s958_s8 }
  0x26   : > { %s1437_s15 = scalar_select %p38_p11, %s1301_s11, %s40_s3  }
  0x27   : > { %s151_s24 = scalar_lea.hbm %s1581_s0, %s992_s16  ;;  %s152_s27 = sshll.u32 %s143_s26, 4  ;;  %s153_s27 = int_to_ptr.vmem [resolvable:$true] %s152_s27 }
  0x28   : > { %p1445_p2 = pnand %p1111_p0, %p1422_p12  ;;  %s140_s28 = scalar_lea.sflag [#allocation3], %s139_s7 }
  0x29   : > { %s1214_s29 = scalar_lea.vmem %s153_s27, 1024  ;;  %s1318_s30 = smov [#allocation2]  }
  0x2a   : > { %p1203_p3 = pneg %p1445_p2  ;;  %p1215_p5 = scmp.ne.s32.totalorder %s153_s27, %s1214_s29 }
  0x2b   : > { %s1219_s3 = sshll.u32 %s1318_s30, 4  ;;  %s1220_s3 = int_to_ptr.vmem [resolvable:$false] %s1219_s3 }
  0x2c   : > { %p1217_p7 = pnand %p1215_p5, %p1203_p3  ;;  %s1221_s6 = scalar_lea.vmem %s1220_s3, 2048 }
  0x2d   : > { %p1222_p4 = scmp.lt.s32.totalorder %s153_s27, %s1220_s3  ;;  %p1223_p9 = scmp.lt.s32.totalorder %s1221_s6, %s1214_s29 }
  0x2e   : > { %p1218_p6 = pneg %p1217_p7 }
  0x2f   : > { %p1224_p11 = por %p1223_p9, %p1222_p4 }
  0x31   : > { %p1225_p10 = pnand %p1224_p11, %p1218_p6 }
  0x33   : > { %1228 = shalt.err (!%p1225_p10)
}
  0x34   : > { %s1319_s4 = smov 128   ;;  %s1320_s8 = smov 8  }
  0x35   : > { %1105 = dma.hbm_to_vmem [thread:$0]  (!%p1445_p2), %s151_s24, 1024, %s153_s27, %s140_s28, %s1319_s4, %s1319_s4, %s1320_s8  }
  0x36   : > { %164 = sbr.rel (%p1395_p8) target bundleno = 327 (0x147), region = 28  ;;  %s1456_s7 = sand.u32 (!%p1395_p8), 1, %s1297_s10  }
  0x37   : > { %s962_s16 = sshll.u32 (!%p1395_p8), %s1456_s7, 6  ;;  %s167_s22 = scalar_lea.sflag (!%p1395_p8), [#allocation3], %s1456_s7 }
  0x38   : > { %s1460_s23 = scalar_lea.vmem (!%p1395_p8), [#allocation2], %s962_s16  ;;  %p1594_p12 = scmp.ne.s32.totalorder (!%p1395_p8), %s1587_s19, 0 }
  0x3b   : > { %1280 = dma.done.wait (%p1594_p12), %s167_s22, 1024  }
  0x3c   : > { %1282 = vsyncadd (%p1594_p12), %s167_s22, 4294966272 }
  0x3d   : > { %1284 = dma.done.wait (%p1375_p1), [#allocation6], 512  }
  0x3e   : > { %1286 = vsyncadd (%p1375_p1), [#allocation6], 4294966784  ;;  %v1321_v0 = vmov 0.0   ;;  %vm1322_vm0 = vmmov 0   ;;  %v1171_v1 = vld [vmem:[#allocation5] sm:$0xff]   ;;  %v199_v3 = vld [vmem:[%s1460_s23 + $0x8] sm:$0xff] }
  0x3f   : > { %1024 = vmatprep.subr.bf16.mxu1 %v1321_v0  ;;  %1018 = vmatprep.subr.bf16.mxu0 %v1321_v0  ;;  %v198_v2 = vld [vmem:[%s1460_s23] sm:$0xff]  ;;  %vm219_vm1 = vcmask 130048   ;;  %v1172_v5 = vld [vmem:[#allocation5 + $0x8] sm:$0xff]   ;;  %v969_v6 = vld [vmem:[%s1460_s23 + $0x10] sm:$0xff]  ;;  %s964_s17 = sshll.u32 %s1456_s7, 4  ;;  %vm837_vm2 = vcmask 523264  }
  0x40   : > { %1026 = vmatprep.mubr.msk.bf16.mxu1 %vm1322_vm0, %v1321_v0  ;;  %1020 = vmatprep.mubr.msk.bf16.mxu0 %vm1322_vm0, %v1321_v0  ;;  %v202_v4 = vpack.c.bf16 %v199_v3, %v198_v2  ;;  %v970_v7 = vld [vmem:[%s1460_s23 + $0x18] sm:$0xff]  ;;  %v975_v21 = vld [vmem:[%s1460_s23 + $0x20] sm:$0xff]  ;;  %v976_v22 = vld [vmem:[%s1460_s23 + $0x28] sm:$0xff]  ;;  %s993_s19 = sshll.u32 %s1305_s12, 8  ;;  %s194_s21 = scalar_lea.vmem [#allocation7], %s964_s17 }
  0x41   : > { %1025 = vmatpush3.bf16.msra.mxu1 %v1171_v1  ;;  %1019 = vmatpush3.bf16.msra.mxu0 %v1171_v1  ;;  %v360_v10 = vpack.c.bf16 %v970_v7, %v969_v6  ;;  %v521_v27 = vpack.c.bf16 %v976_v22, %v975_v21  ;;  %v981_v31 = vld [vmem:[%s1460_s23 + $0x30] sm:$0xff]  ;;  %v982_v32 = vld [vmem:[%s1460_s23 + $0x38] sm:$0xff]  ;;  %s856_s24 = sshll.u32 %s194_s21, 4  ;;  %s1531_s18 = scalar_lea.hbm %s1583_s2, %s993_s19  ;;  %s1533_s24 = int_to_ptr.vmem [resolvable:$true] %s856_s24 }
  0x42   : > { %1030 = vmatprep.subr.bf16.mxu0 %v1321_v0  ;;  %1036 = vmatprep.subr.bf16.mxu1 %v1321_v0  ;;  %v203_v8 = vunpack.c.l.bf16 %v202_v4  ;;  %v204_v9 = vunpack.c.h.bf16 %v202_v4  ;;  %v682_v36 = vpack.c.bf16 %v982_v32, %v981_v31  ;;  %v1173_v37 = vld [vmem:[#allocation5 + $0x10] sm:$0xff]   ;;  %v1174_v45 = vld [vmem:[#allocation5 + $0x18] sm:$0xff]   ;;  %s841_s28 = scalar_lea.sflag [#allocation4], %s1456_s7  ;;  %s1229_s12 = scalar_lea.vmem %s1533_s24, 256 }
  0x43   : > { %v361_v13 = vunpack.c.l.bf16 %v360_v10  ;;  %v362_v14 = vunpack.c.h.bf16 %v360_v10  ;;  %v522_v34 = vunpack.c.l.bf16 %v521_v27  ;;  %v523_v35 = vunpack.c.h.bf16 %v521_v27  ;;  %p1230_p1 = scmp.ne.s32.totalorder %s1533_s24, %s1229_s12  ;;  %s1323_s29 = smov [#allocation7]  }
  0x44   : > { %1027 = vmatmul.mubr.msk.bf16.vlgmr.msra.gmra.mxu1 %vm219_vm1, %v202_v4  ;;  %v205_v11 = vsub.f32 %v198_v2, %v203_v8  ;;  %v206_v12 = vsub.f32 %v199_v3, %v204_v9  ;;  %v683_v40 = vunpack.c.l.bf16 %v682_v36  ;;  %v684_v41 = vunpack.c.h.bf16 %v682_v36  ;;  %s1233_s30 = sshll.u32 %s1323_s29, 4  ;;  %s1234_s30 = int_to_ptr.vmem [resolvable:$false] %s1233_s30 }
  0x45   : > { %1037 = vmatpush3.bf16.msra.mxu1 %v1172_v5  ;;  %1038 = vmatprep.mubr.msk.bf16.mxu1 %vm1322_vm0, %v1321_v0  ;;  %v363_v16 = vsub.f32 %v969_v6, %v361_v13  ;;  %v364_v17 = vsub.f32 %v970_v7, %v362_v14  ;;  %v524_v38 = vsub.f32 %v975_v21, %v522_v34  ;;  %p1231_p8 = pnand %p1230_p1, %p1428_p13  ;;  %s1235_s3 = scalar_lea.vmem %s1234_s30, 512 }
  0x46   : > { %1048 = vmatprep.subr.bf16.mxu1 %v1321_v0  ;;  %v207_v15 = vpack.c.bf16 %v206_v12, %v205_v11  ;;  %v525_v39 = vsub.f32 %v976_v22, %v523_v35  ;;  %v685_v43 = vsub.f32 %v981_v31, %v683_v40  ;;  %v686_v44 = vsub.f32 %v982_v32, %v684_v41  ;;  %p1236_p0 = scmp.lt.s32.totalorder %s1533_s24, %s1234_s30  ;;  %p1237_p2 = scmp.lt.s32.totalorder %s1235_s3, %s1229_s12 }
  0x47   : > { %v365_v20 = vpack.c.bf16 %v364_v17, %v363_v16  ;;  %p1232_p10 = pneg %p1231_p8 }
  0x48   : > { %v208_v18 = vunpack.c.l.bf16 %v207_v15  ;;  %v209_v19 = vunpack.c.h.bf16 %v207_v15  ;;  %1021 = vmatmul.mubr.msk.bf16.vlgmr.msra.gmra.mxu0 %vm219_vm1, %v207_v15  ;;  %v526_v42 = vpack.c.bf16 %v525_v39, %v524_v38  ;;  %v687_v46 = vpack.c.bf16 %v686_v44, %v685_v43  ;;  %p1238_p3 = por %p1237_p2, %p1236_p0 }
  0x49   : > { %1031 = vmatpush3.bf16.msra.mxu0 %v1171_v1  ;;  %1032 = vmatprep.mubr.msk.bf16.mxu0 %vm1322_vm0, %v1321_v0  ;;  %v366_v25 = vunpack.c.l.bf16 %v365_v20  ;;  %v367_v26 = vunpack.c.h.bf16 %v365_v20 }
  0x4a   : > { %v210_v23 = vsub.f32 %v205_v11, %v208_v18  ;;  %v211_v24 = vsub.f32 %v206_v12, %v209_v19  ;;  %1042 = vmatprep.subr.bf16.mxu0 %v1321_v0  ;;  %v527_v47 = vunpack.c.l.bf16 %v526_v42  ;;  %v528_v48 = vunpack.c.h.bf16 %v526_v42  ;;  %p1239_p5 = pnand %p1238_p3, %p1232_p10 }
  0x4b   : > { %v368_v29 = vsub.f32 %v363_v16, %v366_v25  ;;  %v369_v30 = vsub.f32 %v364_v17, %v367_v26  ;;  %v688_v49 = vunpack.c.l.bf16 %v687_v46  ;;  %v689_v50 = vunpack.c.h.bf16 %v687_v46 }
  0x4c   : > { %1039 = vmatmul.mubr.msk.bf16.vlgmr.msra.gmra.mxu1 %vm219_vm1, %v360_v10  ;;  %v212_v28 = vpack.c.bf16 %v211_v24, %v210_v23  ;;  %v529_v51 = vsub.f32 %v524_v38, %v527_v47  ;;  %v530_v52 = vsub.f32 %v525_v39, %v528_v48 }
  0x4d   : > { %1049 = vmatpush3.bf16.msra.mxu1 %v1172_v5  ;;  %1050 = vmatprep.mubr.msk.bf16.mxu1 %vm1322_vm0, %v1321_v0  ;;  %v370_v33 = vpack.c.bf16 %v369_v30, %v368_v29  ;;  %v690_v53 = vsub.f32 %v685_v43, %v688_v49  ;;  %v691_v54 = vsub.f32 %v686_v44, %v689_v50 }
  0x4e   : > { %1060 = vmatprep.subr.bf16.mxu1 %v1321_v0  ;;  %v531_v55 = vpack.c.bf16 %v530_v52, %v529_v51 }
  0x4f   : > { %v692_v56 = vpack.c.bf16 %v691_v54, %v690_v53 }
  0x50   : > { %1033 = vmatmul.mubr.msk.bf16.vlgmr.msra.gmra.mxu0 %vm219_vm1, %v212_v28 }
  0x51   : > { %1043 = vmatpush3.bf16.msra.mxu0 %v1172_v5  ;;  %1044 = vmatprep.mubr.msk.bf16.mxu0 %vm1322_vm0, %v1321_v0 }
  0x52   : > { %1054 = vmatprep.subr.bf16.mxu0 %v1321_v0 }
  0x54   : > { %1051 = vmatmul.mubr.msk.bf16.vlgmr.msra.gmra.mxu1 %vm219_vm1, %v370_v33 }
  0x55   : > { %1061 = vmatpush3.bf16.msra.mxu1 %v1173_v37  ;;  %1062 = vmatprep.mubr.msk.bf16.mxu1 %vm1322_vm0, %v1321_v0 }
  0x56   : > { %1072 = vmatprep.subr.bf16.mxu1 %v1321_v0 }
  0x58   : > { %1045 = vmatmul.mubr.msk.bf16.vlgmr.msra.gmra.mxu0 %vm219_vm1, %v365_v20 }
  0x59   : > { %1055 = vmatpush3.bf16.msra.mxu0 %v1173_v37  ;;  %1056 = vmatprep.mubr.msk.bf16.mxu0 %vm1322_vm0, %v1321_v0 }
  0x5a   : > { %1066 = vmatprep.subr.bf16.mxu0 %v1321_v0 }
  0x5c   : > { %1063 = vmatmul.mubr.msk.bf16.vlgmr.msra.gmra.mxu1 %vm219_vm1, %v526_v42 }
  0x5d   : > { %1073 = vmatpush3.bf16.msra.mxu1 %v1174_v45  ;;  %1074 = vmatprep.mubr.msk.bf16.mxu1 %vm1322_vm0, %v1321_v0 }
  0x5e   : > { %1084 = vmatprep.subr.bf16.mxu1 %v1321_v0 }
  0x60   : > { %1057 = vmatmul.mubr.msk.bf16.vlgmr.msra.gmra.mxu0 %vm219_vm1, %v521_v27 }
  0x61   : > { %1067 = vmatpush3.bf16.msra.mxu0 %v1173_v37  ;;  %1068 = vmatprep.mubr.msk.bf16.mxu0 %vm1322_vm0, %v1321_v0 }
  0x62   : > { %1078 = vmatprep.subr.bf16.mxu0 %v1321_v0 }
  0x64   : > { %1075 = vmatmul.mubr.msk.bf16.vlgmr.msra.gmra.mxu1 %vm219_vm1, %v682_v36 }
  0x65   : > { %1085 = vmatpush3.bf16.msra.mxu1 %v1174_v45  ;;  %1086 = vmatprep.mubr.msk.bf16.mxu1 %vm1322_vm0, %v1321_v0 }
  0x68   : > { %1069 = vmatmul.mubr.msk.bf16.vlgmr.msra.gmra.mxu0 %vm219_vm1, %v531_v55 }
  0x69   : > { %1079 = vmatpush3.bf16.msra.mxu0 %v1174_v45  ;;  %1080 = vmatprep.mubr.msk.bf16.mxu0 %vm1322_vm0, %v1321_v0 }
  0x6c   : > { %1087 = vmatmul.mubr.msk.bf16.vlgmr.msra.gmra.mxu1 %vm219_vm1, %v692_v56 }
  0x70   : > { %1081 = vmatmul.mubr.msk.bf16.vlgmr.msra.gmra.mxu0 %vm219_vm1, %v687_v46 }
 0x104   : > { %v301_v57 = vpop.f32.mrf.mxu1 }
 0x106   : > { %v1028_v58 = vpop.f32.mrf.mxu1 }
 0x108   : > { %v304_v59 = vpop.f32.mrf.mxu1  ;;  %v257_v60 = vpop.f32.mrf.mxu0 }
 0x109   : > { %v302_v11 = vadd.f32 %v301_v57, %v257_v60 }
 0x10a   : > { %v1029_v61 = vpop.f32.mrf.mxu1  ;;  %v1022_v62 = vpop.f32.mrf.mxu0 }
 0x10c   : > { %v414_v63 = vpop.f32.mrf.mxu1  ;;  %v260_v1 = vpop.f32.mrf.mxu0 }
 0x10d   : > { %v305_v17 = vadd.f32 %v304_v59, %v260_v1 }
 0x10e   : > { %v1040_v2 = vpop.f32.mrf.mxu1  ;;  %v1023_v3 = vpop.f32.mrf.mxu0 }
 0x110   : > { %v417_v4 = vpop.f32.mrf.mxu1  ;;  %v345_v5 = vpop.f32.mrf.mxu0 }
 0x111   : > { %v352_v14 = vadd.f32 %v345_v5, %v302_v11 }
 0x112   : > { %v1041_v6 = vpop.f32.mrf.mxu1  ;;  %v1034_v7 = vpop.f32.mrf.mxu0 }
 0x113   : > { %v421_v21 = vadd.f32 %v414_v63, %v352_v14 }
 0x114   : > { %v506_v8 = vpop.f32.mrf.mxu1  ;;  %v348_v0 = vpop.f32.mrf.mxu0 }
 0x115   : > { %v353_v20 = vadd.f32 %v348_v0, %v305_v17 }
 0x116   : > { %v1052_v9 = vpop.f32.mrf.mxu1  ;;  %v1035_v10 = vpop.f32.mrf.mxu0 }
 0x117   : > { %v422_v27 = vadd.f32 %v417_v4, %v353_v20 }
 0x118   : > { %v509_v12 = vpop.f32.mrf.mxu1  ;;  %v460_v13 = vpop.f32.mrf.mxu0 }
 0x119   : > { %v467_v24 = vadd.f32 %v460_v13, %v421_v21 }
 0x11a   : > { %v1053_v15 = vpop.f32.mrf.mxu1  ;;  %v1046_v16 = vpop.f32.mrf.mxu0 }
 0x11b   : > { %v513_v31 = vadd.f32 %v506_v8, %v467_v24 }
 0x11c   : > { %v621_v18 = vpop.f32.mrf.mxu1  ;;  %v463_v19 = vpop.f32.mrf.mxu0 }
 0x11d   : > { %v468_v30 = vadd.f32 %v463_v19, %v422_v27 }
 0x11e   : > { %v1064_v22 = vpop.f32.mrf.mxu1  ;;  %v1047_v23 = vpop.f32.mrf.mxu0 }
 0x11f   : > { %v514_v37 = vadd.f32 %v509_v12, %v468_v30 }
 0x120   : > { %v624_v25 = vpop.f32.mrf.mxu1  ;;  %v575_v26 = vpop.f32.mrf.mxu0 }
 0x121   : > { %v582_v34 = vadd.f32 %v575_v26, %v513_v31 }
 0x122   : > { %v1065_v28 = vpop.f32.mrf.mxu1  ;;  %v1058_v29 = vpop.f32.mrf.mxu0 }
 0x123   : > { %v628_v41 = vadd.f32 %v621_v18, %v582_v34 }
 0x124   : > { %v736_v32 = vpop.f32.mrf.mxu1  ;;  %v578_v33 = vpop.f32.mrf.mxu0 }
 0x125   : > { %v583_v40 = vadd.f32 %v578_v33, %v514_v37 }
 0x126   : > { %v1076_v35 = vpop.f32.mrf.mxu1  ;;  %v1059_v36 = vpop.f32.mrf.mxu0 }
 0x127   : > { %v629_v47 = vadd.f32 %v624_v25, %v583_v40 }
 0x128   : > { %v739_v38 = vpop.f32.mrf.mxu1  ;;  %v667_v39 = vpop.f32.mrf.mxu0 }
 0x129   : > { %v674_v44 = vadd.f32 %v667_v39, %v628_v41 }
 0x12a   : > { %v1077_v42 = vpop.f32.mrf.mxu1  ;;  %v1070_v43 = vpop.f32.mrf.mxu0 }
 0x12b   : > { %v743_v51 = vadd.f32 %v736_v32, %v674_v44 }
 0x12c   : > { %v828_v45 = vpop.f32.mrf.mxu1  ;;  %v670_v46 = vpop.f32.mrf.mxu0 }
 0x12d   : > { %v675_v50 = vadd.f32 %v670_v46, %v629_v47 }
 0x12e   : > { %v1088_v48 = vpop.f32.mrf.mxu1  ;;  %v1071_v49 = vpop.f32.mrf.mxu0 }
 0x12f   : > { %v744_v58 = vadd.f32 %v739_v38, %v675_v50 }
 0x130   : > { %v831_v52 = vpop.f32.mrf.mxu1  ;;  %v782_v53 = vpop.f32.mrf.mxu0 }
 0x131   : > { %v789_v54 = vadd.f32 %v782_v53, %v743_v51 }
 0x132   : > { %v1089_v55 = vpop.f32.mrf.mxu1  ;;  %v1082_v56 = vpop.f32.mrf.mxu0 }
 0x133   : > { %v835_v57 = vadd.f32 %v828_v45, %v789_v54 }
 0x134   : > { %v785_v59 = vpop.f32.mrf.mxu0 }
 0x135   : > { %838 = vst.msk [vmem:[%s194_s21] sm:$0xff] %vm837_vm2, %v835_v57  ;;  %v790_v60 = vadd.f32 %v785_v59, %v744_v58 }
 0x136   : > { %v1083_v61 = vpop.f32.mrf.mxu0 }
 0x137   : > { %v836_v62 = vadd.f32 %v831_v52, %v790_v60 }
 0x139   : > { %839 = vst.msk [vmem:[%s194_s21 + $0x8] sm:$0xff] %vm837_vm2, %v836_v62 }
 0x13a   : > { %1242 = shalt.err (!%p1239_p5)
}
 0x13b   : > { %s1243_s6 = scalar_lea.hbm %s1531_s18, 256  ;;  %s1247_s16 = scalar_lea.hbm %s1583_s2, 512 }
 0x13c   : > { %p1244_p7 = scmp.ne.s32.totalorder %s1531_s18, %s1243_s6  ;;  %p1248_p9 = scmp.lt.s32.totalorder %s1531_s18, %s1583_s2 }
 0x13d   : > { %p1249_p11 = scmp.lt.s32.totalorder %s1247_s16, %s1243_s6 }
 0x13e   : > { %p1245_p6 = pnand %p1244_p7, %p1428_p13 }
 0x13f   : > { %p1250_p12 = por %p1249_p11, %p1248_p9 }
 0x140   : > { %p1246_p4 = pneg %p1245_p6 }
 0x142   : > { %p1251_p1 = pnand %p1250_p12, %p1246_p4 }
 0x144   : > { %1254 = shalt.err (!%p1251_p1)
}
 0x145   : > { %s1324_s17 = smov 128   ;;  %s1325_s19 = smov 8  }
 0x146   : > { %1096 = dma.vmem_to_hbm [thread:$0]  (%p1428_p13), %s1533_s24, 256, %s1531_s18, %s841_s28, %s1324_s17, %s1324_s17, %s1325_s19  }
 0x147 PF: > { %s871_s21 = sand.u32 1, %s1293_s9   ;;  %p1595_p8 = scmp.ne.s32.totalorder %s1588_s20, 0 }
 0x148   : > { %p1596_p10 = scmp.ge.s32.totalorder %s1313_s14, 2  ;;  %s872_s26 = scalar_lea.sflag [#allocation4], %s871_s21 }
 0x14a   : > { %p1107_p0 = pnand %p1596_p10, %p1595_p8 }
 0x14c   : > { %p1108_p2 = pneg %p1107_p0 }
 0x14e   : > { %1288 = dma.done.wait (%p1108_p2), %s872_s26, 256  }
 0x14f   : > { %1290 = vsyncadd (%p1108_p2), %s872_s26, 4294967040  ;;  %s19_s14 = sadd.s32 1, %s1313_s14   ;;  %s1597_s9 = smov %s1297_s10 }
 0x150   : > { %p16_p3 = scmp.ge.s32.totalorder %s19_s14, 4   ;;  %s1598_s10 = smov %s1301_s11 }
 0x151   : > { %s1599_s11 = smov %s1437_s15  ;;  %s1600_s12 = smov %s1309_s13 }
 0x152   : > { %s1601_s13 = smov %s1603_s25  ;;  %18 = sbr.rel (!%p16_p3) target bundleno = 7 (0x7), region = 83 }
 0x157   :  { %877 = vsyncpa [#allocation3], 1 }
 0x158   :  { %879 = vsyncpa [#allocation3 + $0x1], 1 }
 0x159   :  { %880 = vsyncpa [#allocation6], 1 }
 0x15a   :  { %881 = vsyncpa [#allocation4], 1 }
 0x15b   :  { %883 = vsyncpa [#allocation4 + $0x1], 1 }

</bundles_post_ra>
